<compile_context>
chip_gen: v5e
topology: v5e:2x2
jax: 0.10.0
libtpu: 0.0.40
codegen_flags: <defaults>
</compile_context>

<pallas_src>
import functools

import jax
import jax.numpy as jnp
import numpy as np
from jax.experimental import pallas as pl
from jax.experimental.pallas import tpu as pltpu


def _res_bottleneck_kernel(x_ref, w_ref, v_ref, m_ref, o_ref, patches_ref,
                           *, Cin, Cout, H, W):
    # x_ref: (1, Cin, HW)  channels on sublanes, (h, w) flattened on lanes
    # w_ref: (Cout, 9*Cout + Cout + Cin + Cin)  packed [w3' | w4 | sid*w0 | w1']
    # v_ref: (Cmax, 5)     packed column vectors [s0, t0, t2', t3', b_final]
    # m_ref: (9, HW)       host-precomputed 3x3 boundary masks (f32 0/1)
    # o_ref: (1, Cout, HW) lane-dense output
    HW = H * W
    x = x_ref[0]                                   # (Cin, HW) f32

    # ---- unpack per-channel column vectors (static slices, tiny) ----
    s0 = v_ref[:Cin, 0:1]          # BN1 scale (input channels)
    t0 = v_ref[:Cin, 1:2]          # BN1 shift
    t2 = v_ref[:Cout, 2:3]         # BN2 shift  (conv1 bias folded in)
    t3 = v_ref[:Cout, 3:4]         # BN3 shift  (conv3x3 bias folded in)
    bf = v_ref[:Cout, 4:5]         # final bias (b_last + tid + sid*b0)

    # ---- unpack packed weights (static column slices) ----
    o3 = 9 * Cout
    om = o3 + Cout + Cin
    w3 = w_ref[:, :o3]             # (Cout, 9*Cout)   BN3 scale folded
    wm = w_ref[:, o3:om]           # (Cout, Cout+Cin) [w4 | sid*w0]
    w1 = w_ref[:, om:om + Cin]     # (Cout, Cin)      BN2 scale folded

    # ---- main branch: BN1 + ReLU on the raw input ----
    a = jnp.maximum(x * s0 + t0, 0.0)

    # ---- conv 1x1 (Cin -> Cout): BN2 scale folded into w1, + shift + ReLU ----
    y = jnp.maximum(jnp.dot(w1, a, preferred_element_type=jnp.float32) + t2, 0.0)

    # ---- conv 3x3 (pad=1, stride=1) as ONE im2col matmul ----
    # Spatial shifts = lane rolls (XLU slot); boundary masks precomputed on the
    # host; each tap is streamed straight into the VMEM scratch (bounded live
    # range, no concat of 9 live taps).
    k = 0
    for dy in (-1, 0, 1):
        for dx in (-1, 0, 1):
            off = dy * W + dx
            rolled = pltpu.roll(y, shift=(-off) % HW, axis=1) if off else y
            patches_ref[k * Cout:(k + 1) * Cout, :] = rolled * m_ref[k:k + 1, :]
            k += 1
    z = jnp.dot(w3, patches_ref[...], preferred_element_type=jnp.float32)
    z = jnp.maximum(z + t3, 0.0)                   # BN3 shift + ReLU

    # ---- final 1x1 conv + identity (conv0 1x1 + BN0) merged into one matmul ----
    #   out = [w4 | sid*w0] @ [z ; x] + (b_last + tid + sid*b0)
    zx = jnp.concatenate([z, x], axis=0)           # (Cout+Cin, HW)
    out = jnp.dot(wm, zx, preferred_element_type=jnp.float32) + bf
    o_ref[0] = out.astype(o_ref.dtype)


def _fold_bn(gamma, beta, mean, var, eps=1e-5):
    s = gamma / jnp.sqrt(var + eps)
    return s, beta - mean * s


def res_bottleneck_pallas(x_nchw, bn1, w1, b1, bn2, w3x3, b2, bn3, w4, b3,
                          w0, b0, bn0, eps=1e-5):
    """x_nchw: (N, Cin, H, W). Conv weights in PyTorch (O, I, kh, kw) layout."""
    N, Cin, H, W = x_nchw.shape
    Cout = w1.shape[0]
    HW = H * W

    # (N, Cin, H, W) -> (N, Cin, HW): a free reshape, no transpose kernel.
    x3 = x_nchw.reshape(N, Cin, HW).astype(jnp.float32)

    # Fold BatchNorms (inference form); fold conv biases into the following BN
    # shifts and BN scales into the preceding conv weights.
    s0, t0 = _fold_bn(*bn1, eps)
    s2, t2 = _fold_bn(*bn2, eps)
    s3, t3 = _fold_bn(*bn3, eps)
    sid, tid = _fold_bn(*bn0, eps)

    w1m = (s2[:, None] * w1.reshape(Cout, Cin)).astype(jnp.float32)
    t2f = (t2 + s2 * b1).astype(jnp.float32)
    # 3x3 weight -> (O, kh, kw, I) -> (O, 9*I): tap-major, channel-minor, to
    # match the im2col row order built in the kernel.
    w3m = jnp.transpose(w3x3, (0, 2, 3, 1)).reshape(Cout, 9 * Cout)
    w3m = (s3[:, None] * w3m).astype(jnp.float32)
    t3f = (t3 + s3 * b2).astype(jnp.float32)
    w4m = w4.reshape(Cout, Cout).astype(jnp.float32)
    w0m = (sid[:, None] * w0.reshape(Cout, Cin)).astype(jnp.float32)
    bff = (b3 + tid + sid * b0).astype(jnp.float32)   # final bias (identity folded)

    # Pack weights into one block: [w3' | w4 | sid*w0 | w1']  (big matmul first,
    # so it starts at lane offset 0).
    w_packed = jnp.concatenate([w3m, w4m, w0m, w1m], axis=1)

    # Pack per-channel vectors into one (Cmax, 5) block (columns).
    cmax = max(Cin, Cout)

    def _col(v):
        v = v.astype(jnp.float32)
        return jnp.pad(v, (0, cmax - v.shape[0])) if v.shape[0] < cmax else v

    v_packed = jnp.stack([_col(s0), _col(t0), _col(t2f), _col(t3f), _col(bff)],
                         axis=1)                                    # (cmax, 5)

    # Host-precomputed 3x3 boundary masks (9, HW): no iota / div / mod in-kernel.
    hh = np.arange(HW) // W
    ww = np.arange(HW) % W
    m_rows = []
    for dy in (-1, 0, 1):
        for dx in (-1, 0, 1):
            valid = ((hh + dy >= 0) & (hh + dy < H) &
                     (ww + dx >= 0) & (ww + dx < W))
            m_rows.append(valid.astype(np.float32))
    masks = jnp.asarray(np.stack(m_rows, axis=0))                   # (9, HW)

    flops = int(2 * N * HW * (Cin * Cout + 9 * Cout * Cout + (Cout + Cin) * Cout))
    bytes_accessed = int(4 * (x3.size + N * Cout * HW + w_packed.size
                              + v_packed.size + masks.size))
    cost = pl.CostEstimate(flops=flops, transcendentals=0,
                           bytes_accessed=bytes_accessed)

    out3 = pl.pallas_call(
        functools.partial(_res_bottleneck_kernel, Cin=Cin, Cout=Cout, H=H, W=W),
        out_shape=jax.ShapeDtypeStruct((N, Cout, HW), jnp.float32),
        grid=(N,),                      # one image per step; megacore splits on v7x
        in_specs=[
            pl.BlockSpec((1, Cin, HW), lambda n: (n, 0, 0)),
            # Constant blocks: block index does not change across grid steps,
            # so they are DMA'd once and stay resident in VMEM.
            pl.BlockSpec(w_packed.shape, lambda n: (0, 0)),
            pl.BlockSpec(v_packed.shape, lambda n: (0, 0)),
            pl.BlockSpec(masks.shape, lambda n: (0, 0)),
        ],
        out_specs=pl.BlockSpec((1, Cout, HW), lambda n: (n, 0, 0)),
        scratch_shapes=[pltpu.VMEM((9 * Cout, HW), jnp.float32)],   # im2col patches
        compiler_params=pltpu.CompilerParams(
            dimension_semantics=("parallel",)),
        cost_estimate=cost,
    )(x3, w_packed, v_packed, masks)

    return out3.reshape(N, Cout, H, W)


# ----------------------------- pure-JAX reference -----------------------------

def res_bottleneck_ref(x, bn1, w1, b1, bn2, w3x3, b2, bn3, w4, b3,
                       w0, b0, bn0, eps=1e-5):
    def bn(y, p):
        g, be, m, v = p
        s = (g / jnp.sqrt(v + eps))[None, :, None, None]
        return (y - m[None, :, None, None]) * s + be[None, :, None, None]

    def conv(y, w, bias, pad):
        out = jax.lax.conv_general_dilated(
            y, w, window_strides=(1, 1), padding=pad,
            dimension_numbers=("NCHW", "OIHW", "NCHW"))
        return out + bias[None, :, None, None]

    y = jnp.maximum(bn(x, bn1), 0.0)
    y = conv(y, w1, b1, "VALID")
    y = jnp.maximum(bn(y, bn2), 0.0)
    y = conv(y, w3x3, b2, "SAME")
    y = jnp.maximum(bn(y, bn3), 0.0)
    y = conv(y, w4, b3, "VALID")
    ident = bn(conv(x, w0, b0, "VALID"), bn0)   # MaxPool2d(1) == identity
    return y + ident


if __name__ == "__main__":
    # in_channels != out_channels -> conv0 branch present; stride = 1.
    N, Cin, Cout, H, W = 2, 4, 8, 16, 16

    key = jax.random.PRNGKey(0)
    ks = jax.random.split(key, 32)

    def nrm(i, shape, scale=0.1):
        return scale * jax.random.normal(ks[i], shape, jnp.float32)

    x = jax.random.normal(ks[0], (N, Cin, H, W), jnp.float32)

    w1 = nrm(1, (Cout, Cin, 1, 1))
    b1 = nrm(2, (Cout,))
    w3 = nrm(3, (Cout, Cout, 3, 3))
    b2 = nrm(4, (Cout,))
    w4 = nrm(5, (Cout, Cout, 1, 1))
    b3 = nrm(6, (Cout,))
    w0 = nrm(7, (Cout, Cin, 1, 1))
    b0 = nrm(8, (Cout,))

    def bn_params(i, c):
        g = 1.0 + 0.1 * jax.random.normal(ks[i], (c,), jnp.float32)
        be = 0.1 * jax.random.normal(ks[i + 1], (c,), jnp.float32)
        m = 0.1 * jax.random.normal(ks[i + 2], (c,), jnp.float32)
        v = 1.0 + 0.1 * jnp.abs(jax.random.normal(ks[i + 3], (c,), jnp.float32))
        return (g, be, m, v)

    bn1 = bn_params(9, Cin)     # BN on the input (in_channels)
    bn2 = bn_params(13, Cout)
    bn3 = bn_params(17, Cout)
    bn0 = bn_params(21, Cout)   # BN in the identity (conv0) branch

    out = res_bottleneck_pallas(x, bn1, w1, b1, bn2, w3, b2, bn3, w4, b3,
                                w0, b0, bn0)
    out = jax.block_until_ready(out)

    ref = res_bottleneck_ref(x, bn1, w1, b1, bn2, w3, b2, bn3, w4, b3,
                             w0, b0, bn0)
    np.testing.assert_allclose(np.asarray(out), np.asarray(ref),
                               rtol=5e-4, atol=5e-4)
    assert out.shape == (N, Cout, H, W)

    print("KERNEL_OK")
</pallas_src>

<mosaic_0001>
module attributes {stable_mosaic.version = 11 : i64} {
  func.func @_res_bottleneck_kernel(%arg0: i32, %arg1: memref<1x4x256xf32, #tpu.memory_space<vmem>>, %arg2: memref<8x88xf32, #tpu.memory_space<vmem>>, %arg3: memref<8x5xf32, #tpu.memory_space<vmem>>, %arg4: memref<9x256xf32, #tpu.memory_space<vmem>>, %arg5: memref<1x8x256xf32, #tpu.memory_space<vmem>>, %arg6: memref<72x256xf32, #tpu.memory_space<vmem>>) attributes {dimension_semantics = [#tpu.dimension_semantics<parallel>], iteration_bounds = array<i64: 2>, scalar_prefetch = 0 : i64, scratch_operands = 1 : i64, tpu.core_type = #tpu.core_type<tc>, window_params = [{transform_indices = @transform_0, window_bounds = array<i64: 1, 4, 256>}, {pipeline_mode = #tpu.pipeline_mode<synchronous>, transform_indices = @transform_1, window_bounds = array<i64: 8, 88>}, {pipeline_mode = #tpu.pipeline_mode<synchronous>, transform_indices = @transform_2, window_bounds = array<i64: 8, 5>}, {pipeline_mode = #tpu.pipeline_mode<synchronous>, transform_indices = @transform_3, window_bounds = array<i64: 9, 256>}, {transform_indices = @transform_4, window_bounds = array<i64: 1, 8, 256>}]} {
    %c0 = arith.constant 0 : index
    %c0_0 = arith.constant 0 : index
    %c0_1 = arith.constant 0 : index
    %0 = vector.load %arg1[%c0, %c0_0, %c0_1] : memref<1x4x256xf32, #tpu.memory_space<vmem>>, vector<1x4x256xf32>
    %1 = vector.shape_cast %0 : vector<1x4x256xf32> to vector<4x256xf32>
    %c0_2 = arith.constant 0 : index
    %c0_3 = arith.constant 0 : index
    %2 = vector.load %arg3[%c0_2, %c0_3] : memref<8x5xf32, #tpu.memory_space<vmem>>, vector<4x1xf32>
    %c0_4 = arith.constant 0 : index
    %c1 = arith.constant 1 : index
    %3 = vector.load %arg3[%c0_4, %c1] : memref<8x5xf32, #tpu.memory_space<vmem>>, vector<4x1xf32>
    %c0_5 = arith.constant 0 : index
    %c2 = arith.constant 2 : index
    %4 = vector.load %arg3[%c0_5, %c2] : memref<8x5xf32, #tpu.memory_space<vmem>>, vector<8x1xf32>
    %c0_6 = arith.constant 0 : index
    %c3 = arith.constant 3 : index
    %5 = vector.load %arg3[%c0_6, %c3] : memref<8x5xf32, #tpu.memory_space<vmem>>, vector<8x1xf32>
    %c0_7 = arith.constant 0 : index
    %c4 = arith.constant 4 : index
    %6 = vector.load %arg3[%c0_7, %c4] : memref<8x5xf32, #tpu.memory_space<vmem>>, vector<8x1xf32>
    %c0_8 = arith.constant 0 : index
    %c0_9 = arith.constant 0 : index
    %7 = vector.load %arg2[%c0_8, %c0_9] : memref<8x88xf32, #tpu.memory_space<vmem>>, vector<8x72xf32>
    %c0_10 = arith.constant 0 : index
    %c72 = arith.constant 72 : index
    %8 = vector.load %arg2[%c0_10, %c72] : memref<8x88xf32, #tpu.memory_space<vmem>>, vector<8x12xf32>
    %c0_11 = arith.constant 0 : index
    %c84 = arith.constant 84 : index
    %9 = vector.load %arg2[%c0_11, %c84] : memref<8x88xf32, #tpu.memory_space<vmem>>, vector<8x4xf32>
    %10 = vector.broadcast %2 : vector<4x1xf32> to vector<4x256xf32>
    %11 = arith.mulf %1, %10 : vector<4x256xf32>
    %12 = vector.broadcast %3 : vector<4x1xf32> to vector<4x256xf32>
    %13 = arith.addf %11, %12 : vector<4x256xf32>
    %cst = arith.constant 0.000000e+00 : f32
    %14 = vector.broadcast %cst : f32 to vector<4x256xf32>
    %15 = arith.maximumf %13, %14 : vector<4x256xf32>
    %cst_12 = arith.constant dense<0.000000e+00> : vector<8x256xf32>
    %16 = tpu.matmul %9, %15, %cst_12 {dimension_numbers = #tpu.dot_dimension_numbers<[1], [0], [0], [1], [0, 0, 1, 1], [], []>} : vector<8x4xf32>, vector<4x256xf32>, vector<8x256xf32> -> vector<8x256xf32>
    %17 = vector.broadcast %4 : vector<8x1xf32> to vector<8x256xf32>
    %18 = arith.addf %16, %17 : vector<8x256xf32>
    %cst_13 = arith.constant 0.000000e+00 : f32
    %19 = vector.broadcast %cst_13 : f32 to vector<8x256xf32>
    %20 = arith.maximumf %18, %19 : vector<8x256xf32>
    %c17_i32 = arith.constant 17 : i32
    %21 = tpu.dynamic_rotate %20 by %c17_i32 dim 1 : vector<8x256xf32>, i32 -> vector<8x256xf32>
    %c0_14 = arith.constant 0 : index
    %c0_15 = arith.constant 0 : index
    %22 = vector.load %arg4[%c0_14, %c0_15] : memref<9x256xf32, #tpu.memory_space<vmem>>, vector<1x256xf32>
    %23 = vector.broadcast %22 : vector<1x256xf32> to vector<8x256xf32>
    %24 = arith.mulf %21, %23 : vector<8x256xf32>
    %c0_16 = arith.constant 0 : index
    %c0_17 = arith.constant 0 : index
    %25 = vector.load %arg6[%c0_16, %c0_17] : memref<72x256xf32, #tpu.memory_space<vmem>>, vector<8x256xf32>
    tpu.vector_store %arg6[%c0_16, %c0_17], %24 {strides = array<i32>} : memref<72x256xf32, #tpu.memory_space<vmem>>, vector<8x256xf32>,
    %c16_i32 = arith.constant 16 : i32
    %26 = tpu.dynamic_rotate %20 by %c16_i32 dim 1 : vector<8x256xf32>, i32 -> vector<8x256xf32>
    %c1_18 = arith.constant 1 : index
    %c0_19 = arith.constant 0 : index
    %27 = vector.load %arg4[%c1_18, %c0_19] : memref<9x256xf32, #tpu.memory_space<vmem>>, vector<1x256xf32>
    %28 = vector.broadcast %27 : vector<1x256xf32> to vector<8x256xf32>
    %29 = arith.mulf %26, %28 : vector<8x256xf32>
    %c8 = arith.constant 8 : index
    %c0_20 = arith.constant 0 : index
    %30 = vector.load %arg6[%c8, %c0_20] : memref<72x256xf32, #tpu.memory_space<vmem>>, vector<8x256xf32>
    tpu.vector_store %arg6[%c8, %c0_20], %29 {strides = array<i32>} : memref<72x256xf32, #tpu.memory_space<vmem>>, vector<8x256xf32>,
    %c15_i32 = arith.constant 15 : i32
    %31 = tpu.dynamic_rotate %20 by %c15_i32 dim 1 : vector<8x256xf32>, i32 -> vector<8x256xf32>
    %c2_21 = arith.constant 2 : index
    %c0_22 = arith.constant 0 : index
    %32 = vector.load %arg4[%c2_21, %c0_22] : memref<9x256xf32, #tpu.memory_space<vmem>>, vector<1x256xf32>
    %33 = vector.broadcast %32 : vector<1x256xf32> to vector<8x256xf32>
    %34 = arith.mulf %31, %33 : vector<8x256xf32>
    %c16 = arith.constant 16 : index
    %c0_23 = arith.constant 0 : index
    %35 = vector.load %arg6[%c16, %c0_23] : memref<72x256xf32, #tpu.memory_space<vmem>>, vector<8x256xf32>
    tpu.vector_store %arg6[%c16, %c0_23], %34 {strides = array<i32>} : memref<72x256xf32, #tpu.memory_space<vmem>>, vector<8x256xf32>,
    %c1_i32 = arith.constant 1 : i32
    %36 = tpu.dynamic_rotate %20 by %c1_i32 dim 1 : vector<8x256xf32>, i32 -> vector<8x256xf32>
    %c3_24 = arith.constant 3 : index
    %c0_25 = arith.constant 0 : index
    %37 = vector.load %arg4[%c3_24, %c0_25] : memref<9x256xf32, #tpu.memory_space<vmem>>, vector<1x256xf32>
    %38 = vector.broadcast %37 : vector<1x256xf32> to vector<8x256xf32>
    %39 = arith.mulf %36, %38 : vector<8x256xf32>
    %c24 = arith.constant 24 : index
    %c0_26 = arith.constant 0 : index
    %40 = vector.load %arg6[%c24, %c0_26] : memref<72x256xf32, #tpu.memory_space<vmem>>, vector<8x256xf32>
    tpu.vector_store %arg6[%c24, %c0_26], %39 {strides = array<i32>} : memref<72x256xf32, #tpu.memory_space<vmem>>, vector<8x256xf32>,
    %c4_27 = arith.constant 4 : index
    %c0_28 = arith.constant 0 : index
    %41 = vector.load %arg4[%c4_27, %c0_28] : memref<9x256xf32, #tpu.memory_space<vmem>>, vector<1x256xf32>
    %42 = vector.broadcast %41 : vector<1x256xf32> to vector<8x256xf32>
    %43 = arith.mulf %20, %42 : vector<8x256xf32>
    %c32 = arith.constant 32 : index
    %c0_29 = arith.constant 0 : index
    %44 = vector.load %arg6[%c32, %c0_29] : memref<72x256xf32, #tpu.memory_space<vmem>>, vector<8x256xf32>
    tpu.vector_store %arg6[%c32, %c0_29], %43 {strides = array<i32>} : memref<72x256xf32, #tpu.memory_space<vmem>>, vector<8x256xf32>,
    %c255_i32 = arith.constant 255 : i32
    %45 = tpu.dynamic_rotate %20 by %c255_i32 dim 1 : vector<8x256xf32>, i32 -> vector<8x256xf32>
    %c5 = arith.constant 5 : index
    %c0_30 = arith.constant 0 : index
    %46 = vector.load %arg4[%c5, %c0_30] : memref<9x256xf32, #tpu.memory_space<vmem>>, vector<1x256xf32>
    %47 = vector.broadcast %46 : vector<1x256xf32> to vector<8x256xf32>
    %48 = arith.mulf %45, %47 : vector<8x256xf32>
    %c40 = arith.constant 40 : index
    %c0_31 = arith.constant 0 : index
    %49 = vector.load %arg6[%c40, %c0_31] : memref<72x256xf32, #tpu.memory_space<vmem>>, vector<8x256xf32>
    tpu.vector_store %arg6[%c40, %c0_31], %48 {strides = array<i32>} : memref<72x256xf32, #tpu.memory_space<vmem>>, vector<8x256xf32>,
    %c241_i32 = arith.constant 241 : i32
    %50 = tpu.dynamic_rotate %20 by %c241_i32 dim 1 : vector<8x256xf32>, i32 -> vector<8x256xf32>
    %c6 = arith.constant 6 : index
    %c0_32 = arith.constant 0 : index
    %51 = vector.load %arg4[%c6, %c0_32] : memref<9x256xf32, #tpu.memory_space<vmem>>, vector<1x256xf32>
    %52 = vector.broadcast %51 : vector<1x256xf32> to vector<8x256xf32>
    %53 = arith.mulf %50, %52 : vector<8x256xf32>
    %c48 = arith.constant 48 : index
    %c0_33 = arith.constant 0 : index
    %54 = vector.load %arg6[%c48, %c0_33] : memref<72x256xf32, #tpu.memory_space<vmem>>, vector<8x256xf32>
    tpu.vector_store %arg6[%c48, %c0_33], %53 {strides = array<i32>} : memref<72x256xf32, #tpu.memory_space<vmem>>, vector<8x256xf32>,
    %c240_i32 = arith.constant 240 : i32
    %55 = tpu.dynamic_rotate %20 by %c240_i32 dim 1 : vector<8x256xf32>, i32 -> vector<8x256xf32>
    %c7 = arith.constant 7 : index
    %c0_34 = arith.constant 0 : index
    %56 = vector.load %arg4[%c7, %c0_34] : memref<9x256xf32, #tpu.memory_space<vmem>>, vector<1x256xf32>
    %57 = vector.broadcast %56 : vector<1x256xf32> to vector<8x256xf32>
    %58 = arith.mulf %55, %57 : vector<8x256xf32>
    %c56 = arith.constant 56 : index
    %c0_35 = arith.constant 0 : index
    %59 = vector.load %arg6[%c56, %c0_35] : memref<72x256xf32, #tpu.memory_space<vmem>>, vector<8x256xf32>
    tpu.vector_store %arg6[%c56, %c0_35], %58 {strides = array<i32>} : memref<72x256xf32, #tpu.memory_space<vmem>>, vector<8x256xf32>,
    %c239_i32 = arith.constant 239 : i32
    %60 = tpu.dynamic_rotate %20 by %c239_i32 dim 1 : vector<8x256xf32>, i32 -> vector<8x256xf32>
    %c8_36 = arith.constant 8 : index
    %c0_37 = arith.constant 0 : index
    %61 = vector.load %arg4[%c8_36, %c0_37] : memref<9x256xf32, #tpu.memory_space<vmem>>, vector<1x256xf32>
    %62 = vector.broadcast %61 : vector<1x256xf32> to vector<8x256xf32>
    %63 = arith.mulf %60, %62 : vector<8x256xf32>
    %c64 = arith.constant 64 : index
    %c0_38 = arith.constant 0 : index
    %64 = vector.load %arg6[%c64, %c0_38] : memref<72x256xf32, #tpu.memory_space<vmem>>, vector<8x256xf32>
    tpu.vector_store %arg6[%c64, %c0_38], %63 {strides = array<i32>} : memref<72x256xf32, #tpu.memory_space<vmem>>, vector<8x256xf32>,
    %c0_39 = arith.constant 0 : index
    %c0_40 = arith.constant 0 : index
    %65 = vector.load %arg6[%c0_39, %c0_40] : memref<72x256xf32, #tpu.memory_space<vmem>>, vector<72x256xf32>
    %cst_41 = arith.constant dense<0.000000e+00> : vector<8x256xf32>
    %66 = tpu.matmul %7, %65, %cst_41 {dimension_numbers = #tpu.dot_dimension_numbers<[1], [0], [0], [1], [0, 0, 1, 1], [], []>} : vector<8x72xf32>, vector<72x256xf32>, vector<8x256xf32> -> vector<8x256xf32>
    %67 = vector.broadcast %5 : vector<8x1xf32> to vector<8x256xf32>
    %68 = arith.addf %66, %67 : vector<8x256xf32>
    %cst_42 = arith.constant 0.000000e+00 : f32
    %69 = vector.broadcast %cst_42 : f32 to vector<8x256xf32>
    %70 = arith.maximumf %68, %69 : vector<8x256xf32>
    %71 = tpu.concatenate %70, %1 in 0 : vector<8x256xf32>, vector<4x256xf32> -> vector<12x256xf32>
    %cst_43 = arith.constant dense<0.000000e+00> : vector<8x256xf32>
    %72 = tpu.matmul %8, %71, %cst_43 {dimension_numbers = #tpu.dot_dimension_numbers<[1], [0], [0], [1], [0, 0, 1, 1], [], []>} : vector<8x12xf32>, vector<12x256xf32>, vector<8x256xf32> -> vector<8x256xf32>
    %73 = vector.broadcast %6 : vector<8x1xf32> to vector<8x256xf32>
    %74 = arith.addf %72, %73 : vector<8x256xf32>
    %c0_44 = arith.constant 0 : index
    %c0_45 = arith.constant 0 : index
    %c0_46 = arith.constant 0 : index
    %75 = vector.load %arg5[%c0_44, %c0_45, %c0_46] : memref<1x8x256xf32, #tpu.memory_space<vmem>>, vector<1x8x256xf32>
    %76 = vector.shape_cast %75 : vector<1x8x256xf32> to vector<8x256xf32>
    %77 = vector.shape_cast %74 : vector<8x256xf32> to vector<1x8x256xf32>
    tpu.vector_store %arg5[%c0_44, %c0_45, %c0_46], %77 {strides = array<i32>} : memref<1x8x256xf32, #tpu.memory_space<vmem>>, vector<1x8x256xf32>,
    return
  }
  func.func @transform_0(%arg0: i32) -> (i32, i32, i32) {
    %c0_i32 = arith.constant 0 : i32
    %c0_i32_0 = arith.constant 0 : i32
    %c0_i32_1 = arith.constant 0 : i32
    return %arg0, %c0_i32, %c0_i32_0 : i32, i32, i32
  }
  func.func @transform_1(%arg0: i32) -> (i32, i32) {
    %c0_i32 = arith.constant 0 : i32
    %c0_i32_0 = arith.constant 0 : i32
    %c0_i32_1 = arith.constant 0 : i32
    return %c0_i32, %c0_i32_0 : i32, i32
  }
  func.func @transform_2(%arg0: i32) -> (i32, i32) {
    %c0_i32 = arith.constant 0 : i32
    %c0_i32_0 = arith.constant 0 : i32
    %c0_i32_1 = arith.constant 0 : i32
    return %c0_i32, %c0_i32_0 : i32, i32
  }
  func.func @transform_3(%arg0: i32) -> (i32, i32) {
    %c0_i32 = arith.constant 0 : i32
    %c0_i32_0 = arith.constant 0 : i32
    %c0_i32_1 = arith.constant 0 : i32
    return %c0_i32, %c0_i32_0 : i32, i32
  }
  func.func @transform_4(%arg0: i32) -> (i32, i32, i32) {
    %c0_i32 = arith.constant 0 : i32
    %c0_i32_0 = arith.constant 0 : i32
    %c0_i32_1 = arith.constant 0 : i32
    return %arg0, %c0_i32, %c0_i32_0 : i32, i32, i32
  }
}

</mosaic_0001>

<bundles_post_ra>
// kernel: tpu_custom_call.1
= control target key start
LH: loop header
LB: loop body
LE: loop exit
PB: predicated region body
PF: predicated region fallthrough
CT: control target
= control target key end

     0   :  { %9 = vsyncpa [#allocation4], 0  ;;  %s1327_s0 = inlined_call_operand.hbm [shape: f32[2,4,256], index: 0, kind: input, shape index: {}]   ;;  %s1328_s1 = inlined_call_operand.hbm [shape: f32[8,88], index: 1, kind: input, shape index: {}]   ;;  %s1329_s2 = inlined_call_operand.hbm [shape: f32[8,5], index: 2, kind: input, shape index: {}]   ;;  %s1330_s3 = inlined_call_operand.hbm [shape: f32[9,256], index: 3, kind: input, shape index: {}]   ;;  %s1331_s4 = inlined_call_operand.hbm [shape: f32[2,8,256], index: 4, kind: output, shape index: {}]  }
   0x1   :  { %11 = vsyncpa [#allocation4 + $0x1], 0 }
   0x2   :  { %12 = vsyncpa [#allocation7], 0 }
   0x3   :  { %13 = vsyncpa [#allocation10], 0 }
   0x4   :  { %14 = vsyncpa [#allocation5], 0 }
   0x5   :  { %16 = vsyncpa [#allocation5 + $0x1], 0  ;;  %s1121_s15 = smov 0   ;;  %s1123_s16 = smov 0  }
   0x6   :  { %s1125_s17 = smov 0   ;;  %s1127_s18 = smov 0  }
   0x7 LB: > { %s1142_s19 = sadd.s32 4294967295, %s1073_s18   ;;  %s746_s20 = sadd.s32 4294967294, %s1073_s18   ;;  %s1073_s18 = sphi %s1127_s18, %s1342_s18   ;;  %s1069_s17 = sphi %s1125_s17, %s1341_s17   ;;  %s1065_s16 = sphi %s1123_s16, %s1340_s16   ;;  %s1061_s15 = sphi %s1121_s15, %s1339_s15  }
   0x8   : > { %p42_p0 = scmp.ne.s32.totalorder %s1065_s16, %s1061_s15  ;;  %p43_p1 = scmp.eq.s32.totalorder %s1142_s19, 0 }
   0x9   : > { %p129_p2 = scmp.eq.s32.totalorder %s1142_s19, 1  ;;  %p135_p3 = scmp.eq.s32.totalorder %s746_s20, 1 }
   0xa   : > { %p1151_p4 = por %p43_p1, %p42_p0  ;;  %p747_p5 = scmp.ge.s32.totalorder %s1073_s18, 1 }
   0xb   : > { %p1156_p6 = por %p135_p3, %p42_p0  ;;  %p142_p7 = scmp.lt.s32.totalorder %s1073_s18, 3 }
   0xc   : > { %s154_s25 = sshll.u32 %s1328_s1, 4  ;;  %s1075_s27 = smov [#allocation6]   ;;  %s155_s25 = int_to_ptr.hbm [resolvable:$true] %s154_s25 }
   0xd   : > { %p1164_p8 = pnand %p747_p5, %p142_p7  ;;  %s156_s28 = sshll.u32 %s1075_s27, 4  ;;  %s157_s28 = int_to_ptr.vmem [resolvable:$true] %s156_s28 }
   0xe   : > { %s166_s5 = sshll.u32 %s1329_s2, 4  ;;  %s177_s9 = sshll.u32 %s1330_s3, 4  ;;  %s167_s5 = int_to_ptr.hbm [resolvable:$true] %s166_s5  ;;  %s178_s9 = int_to_ptr.hbm [resolvable:$true] %s177_s9 }
   0xf   : > { %p794_p10 = pneg %p1164_p8  ;;  %s1076_s10 = smov [#allocation8]  }
  0x10   : > { %s168_s11 = sshll.u32 %s1076_s10, 4  ;;  %s1077_s12 = smov [#allocation9]   ;;  %s169_s11 = int_to_ptr.vmem [resolvable:$true] %s168_s11 }
  0x11   : > { %p1176_p11 = pnand %p794_p10, %p43_p1  ;;  %s179_s13 = sshll.u32 %s1077_s12, 4  ;;  %s180_s13 = int_to_ptr.vmem [resolvable:$true] %s179_s13 }
  0x12   : > { %s1078_s14 = smov 256   ;;  %s1079_s20 = smov 16  }
  0x13   : > { %797 = dma.hbm_to_vmem [thread:$0]  (!%p1176_p11), %s155_s25, 128, %s157_s28, [#allocation7]  }
  0x14   : > { %800 = dma.hbm_to_vmem [thread:$0]  (!%p1176_p11), %s167_s5, 128, %s169_s11, [#allocation7]  }
  0x15   : > { %803 = dma.hbm_to_vmem [thread:$0]  (!%p1176_p11), %s178_s9, 512, %s180_s13, [#allocation10], %s1078_s14, %s1078_s14, %s1079_s20  }
  0x16   : > { %s1190_s23 = sadd.s32 1, %s1073_s18   ;;  %s29_s25 = sadd.s32 1, %s1069_s17 }
  0x17   : > { %s26_s24 = ssub.s32 %s1073_s18, %s1190_s23  ;;  %p36_p13 = scmp.ne.s32.totalorder %s1069_s17, %s1065_s16 }
  0x18   : > { %p27_p12 = scmp.eq.s32.totalorder %s26_s24, 0  ;;  %p37_p0 = scmp.eq.s32.totalorder %s1073_s18, 0 }
  0x19   : > { %p1203_p3 = por %p129_p2, %p36_p13  ;;  %p815_p5 = scmp.lt.s32.totalorder %s1073_s18, 2 }
  0x1a   : > { %s1199_s27 = scalar_select %p27_p12, %s1069_s17, %s29_s25  }
  0x1b   : > { %s193_s29 = sand.u32 1, %s1069_s17   ;;  %s776_s30 = sshll.u32 %s1073_s18, 3 }
  0x1c   : > { %p38_p7 = por %p37_p0, %p36_p13  ;;  %s752_s5 = sshll.u32 %s193_s29, 3 }
  0x1d   : > { %s202_s8 = scalar_lea.hbm %s1327_s0, %s776_s30  ;;  %s197_s10 = scalar_lea.vmem [#allocation3], %s752_s5 }
  0x1e   : > { %s204_s9 = sshll.u32 %s202_s8, 4  ;;  %s206_s11 = sshll.u32 %s197_s10, 4  ;;  %s205_s9 = int_to_ptr.hbm [resolvable:$true] %s204_s9  ;;  %s207_s11 = int_to_ptr.vmem [resolvable:$true] %s206_s11 }
  0x1f   : > { %p1213_p10 = pnand %p815_p5, %p38_p7  ;;  %s194_s13 = scalar_lea.sflag [#allocation4], %s193_s29 }
  0x20   : > { %s969_s14 = sshra.s32 %s205_s9, 4  ;;  %s976_s30 = scalar_lea.hbm %s1327_s0, 16  ;;  %s970_s14 = int_to_ptr.hbm [resolvable:$true] %s969_s14 }
  0x21   : > { %s971_s20 = scalar_lea.hbm %s970_s14, 8  ;;  %p973_p11 = pneg %p1213_p10 }
  0x22   : > { %p972_p2 = scmp.ne.s32.totalorder %s970_s14, %s971_s20  ;;  %p977_p0 = scmp.lt.s32.totalorder %s970_s14, %s1327_s0 }
  0x23   : > { %p978_p5 = scmp.lt.s32.totalorder %s976_s30, %s971_s20 }
  0x24   : > { %p974_p12 = pnand %p973_p11, %p972_p2 }
  0x25   : > { %p979_p7 = por %p978_p5, %p977_p0 }
  0x26   : > { %p975_p13 = pneg %p974_p12 }
  0x28   : > { %p980_p9 = pnand %p979_p7, %p975_p13 }
  0x2a   : > { %983 = shalt.err (!%p980_p9)
}
  0x2b   : > { %807 = dma.hbm_to_vmem [thread:$0]  (!%p1213_p10), %s205_s9, 128, %s207_s11, %s194_s13  }
  0x2c   : > { %215 = sbr.rel (%p1164_p8) target bundleno = 745 (0x2e9), region = 36  ;;  %s1230_s29 = sand.u32 (!%p1164_p8), 1, %s1065_s16  }
  0x2d   : > { %s756_s7 = sshll.u32 (!%p1164_p8), %s1230_s29, 3  ;;  %s218_s8 = scalar_lea.sflag (!%p1164_p8), [#allocation4], %s1230_s29 }
  0x2e   : > { %s221_s10 = scalar_lea.vmem (!%p1164_p8), [#allocation3], %s756_s7 }
  0x31   : > { %1044 = dma.done.wait (%p1151_p4), %s218_s8, 128  }
  0x32   : > { %1046 = vsyncadd (%p1151_p4), %s218_s8, 4294967168 }
  0x33   : > { %1048 = dma.done.wait (%p43_p1), [#allocation7], 256  }
  0x34   : > { %1050 = vsyncadd (%p43_p1), [#allocation7], 4294967040 }
  0x35   : > { %1052 = dma.done.wait (%p43_p1), [#allocation10], 512  }
  0x36   : > { %1054 = vsyncadd (%p43_p1), [#allocation10], 4294966784  ;;  %v1080_v0 = vmov 0   ;;  %v263_v1 = vld [vmem:[#allocation8] sm:$0xf]  ;;  %v1246_v2 = vld [vmem:[#allocation6] sm:$0xff]  ;;  %v352_v27 = vlaneseq }
  0x37   : > { %873 = vset.pattern.permute.xlu0 %v1080_v0  ;;  %s1081_s21 = smov 44   ;;  %v1082_v3 = vmov 1   ;;  %v1249_v4 = vld [vmem:[#allocation8] sm:$0xff]  ;;  %v1083_v5 = vmov 2   ;;  %v1084_v6 = vmov 839922192  }
  0x38   : > { %268 = vperm.xlu0 %873, %v263_v1   ;;  %292 = vrot.lane.b32.xlu1 %v1246_v2, %s1081_s21  ;;  %v271_v7 = vunpack.c.l.s4 %v1084_v6  ;;  %v262_v11 = vld [vmem:[%s221_s10] sm:$0xff]  ;;  %vm301_vm0 = vcmask 1043456   ;;  %vm298_vm1 = vcmask 31744   ;;  %s1085_s26 = smov 113   ;;  %s1086_s9 = smov 112   ;;  %v1275_v29 = vand.u32 127, %v352_v27 }
  0x39   : > { %875 = vset.pattern.permute.xlu1 %v1083_v5  ;;  %s1087_s11 = smov 111   ;;  %s1088_s12 = smov 127   ;;  %v494_v30 = vld [vmem:[#allocation9 + $0x10] ss:$8 sm:$0x3]  ;;  %v1094_v54 = vmov 3  }
  0x3a   : > { %v272_v9 = vunpack.c.0.s8 %v271_v7  ;;  %s1089_s13 = smov 15   ;;  %s1090_s14 = smov 1   ;;  %vm490_vm2 = vcmp.lt.s32.totalorder %v1275_v29, 111  ;;  %v496_v31 = vperm.slane %v494_v30, 0  ;;  %v497_v32 = vperm.slane %v494_v30, 1 }
  0x3b   : > { %s1091_s20 = smov 16   ;;  %s1092_s24 = smov 17   ;;  %v476_v39 = vld [vmem:[#allocation9 + $0x7] ss:$8 sm:$0x3]  ;;  %vm472_vm3 = vcmp.lt.s32.totalorder %v1275_v29, 112 }
  0x3c   : > { %s1093_s25 = smov 56   ;;  %v478_v40 = vperm.slane %v476_v39, 0  ;;  %v479_v41 = vperm.slane %v476_v39, 1  ;;  %v458_v49 = vld [vmem:[#allocation9 + $0x6] ss:$8 sm:$0x3] }
  0x3d   : > { %v422_v50 = vld [vmem:[#allocation9 + $0x4] ss:$8 sm:$0x3]  ;;  %v440_v51 = vld [vmem:[#allocation9 + $0x5] ss:$8 sm:$0x3] }
  0x3e   : > { %vm436_vm4 = vcmp.lt.s32.totalorder %v1275_v29, 127  ;;  %vm454_vm5 = vcmp.lt.s32.totalorder %v1275_v29, 113  ;;  %v460_v52 = vperm.slane %v458_v49, 0  ;;  %v461_v53 = vperm.slane %v458_v49, 1  ;;  %s760_s30 = sshll.u32 %s1230_s29, 4  ;;  %s777_s5 = sshll.u32 %s1142_s19, 4 }
  0x3f   : > { %v442_v57 = vperm.slane %v440_v51, 0  ;;  %v443_v58 = vperm.slane %v440_v51, 1  ;;  %v425_v59 = vperm.slane %v422_v50, 1  ;;  %v411_v5 = vld [vmem:[#allocation9 + $0x3] ss:$8 sm:$0x3]  ;;  %s642_s8 = scalar_lea.hbm %s1331_s4, %s777_s5 }
  0x40   : > { %874 = vset.pattern.permute.xlu0 %v1082_v3  ;;  %288 = vperm.xlu1 %875, %v1249_v4   ;;  %v424_v3 = vperm.slane %v422_v50, 0  ;;  %vm407_vm6 = vcmp.lt.s32.totalorder %v1275_v29, 1  ;;  %vm371_vm7 = vcmp.lt.s32.totalorder %v1275_v29, 16  ;;  %vm389_vm8 = vcmp.lt.s32.totalorder %v1275_v29, 15  ;;  %s261_s10 = scalar_lea.vmem [#allocation11], %s760_s30 }
  0x41   : > { %277 = vperm.xlu0 %874, %v263_v1   ;;  %vm354_vm9 = vcmp.lt.s32.totalorder %v1275_v29, 17  ;;  %vm526_vm10 = vcmask 588800   ;;  %v1095_v29 = vmov 4   ;;  %vm581_vm11 = vcmask 97280   ;;  %s644_s21 = sshll.u32 %s261_s10, 4  ;;  %s645_s21 = int_to_ptr.vmem [resolvable:$true] %s644_s21 }
  0x42   : > { %877 = vset.pattern.permute.xlu2 %v1095_v29 }
  0x49   : > { %876 = vset.pattern.permute.xlu0 %v1094_v54 }
  0xaa   : > { %v269_v8 = vpop.permute.xlu0 %268  ;;  %v293_v17 = vpop.permute.xlu1 %292 }
  0xab   : > { %v273_v10 = vperm.slane %v269_v8, %v272_v9 }
  0xad   : > { %v275_v13 = vmul.f32 %v273_v10, %v262_v11 }
  0xb2   : > { %v289_v20 = vpop.permute.xlu1 %288 }
  0xb3   : > { %v278_v12 = vpop.permute.xlu0 %277 }
  0xb4   : > { %v282_v14 = vperm.slane %v278_v12, %v272_v9  ;;  %v414_v12 = vperm.slane %v411_v5, 1 }
  0xb6   : > { %v284_v15 = vadd.f32 %v282_v14, %v275_v13 }
  0xb8   : > { %v285_v16 = vmax.f32 %v284_v15, 0.0 }
  0xba   : > { %295 = vst [vmem:[#allocation1] ss:$2 sm:$0xff] %v285_v16 }
  0xc1   : > { %v296_v18 = vld.sshfl [vmem:[#allocation1] sm:$0xff pattern:$0x75316420]  ;;  %v297_v19 = vld.sshfl [vmem:[#allocation1 + $0x8] sm:$0xff pattern:$0x75316420] }
  0xc2   : > { %761 = vmatpush.msk.msra.mxu0 %vm301_vm0, %v296_v18  ;;  %763 = vmatpush.msk.msra.mxu1 %vm301_vm0, %v297_v19  ;;  %572 = vst [vmem:[#allocation1] ss:$2 sm:$0xff] %v262_v11  ;;  %v413_v11 = vperm.slane %v411_v5, 0  ;;  %v393_v19 = vld [vmem:[#allocation9 + $0x2] ss:$8 sm:$0x3] }
  0xc3   : > { %762 = vmatmul.msk.f32.vlgmr.msra.gmra.mxu0 %vm298_vm1, %v293_v17  ;;  %764 = vmatmul.msk.f32.vlgmr.msra.gmra.mxu1 %vm298_vm1, %v293_v17 }
 0x140   : > { %v323_v21 = vpop.f32.mrf.mxu0  ;;  %v343_v24 = vpop.f32.mrf.mxu1 }
 0x141   : > { %v324_v22 = vadd.f32 %v323_v21, %v289_v20  ;;  %v344_v25 = vadd.f32 %v343_v24, %v289_v20  ;;  %v375_v20 = vld [vmem:[#allocation9 + $0x1] ss:$8 sm:$0x3] }
 0x142   : > { %v378_v27 = vperm.slane %v375_v20, 1 }
 0x143   : > { %v1254_v23 = vmax.f32 %v324_v22, 0.0  ;;  %v1259_v26 = vmax.f32 %v344_v25, 0.0  ;;  %v395_v22 = vperm.slane %v393_v19, 0 }
 0x145   : > { %450 = vrot.lane.b32.xlu0 %v1254_v23, %s1085_s26  ;;  %468 = vrot.lane.b32.xlu1 %v1254_v23, %s1086_s9  ;;  %v429_v9 = vmul.f32 %v425_v59, %v1259_v26  ;;  %v428_v10 = vmul.f32 %v424_v3, %v1254_v23 }
 0x146   : > { %486 = vrot.lane.b32.xlu2 %v1254_v23, %s1087_s11 }
 0x14d   : > { %434 = vrot.lane.b32.xlu0 %v1259_v26, %s1088_s12  ;;  %452 = vrot.lane.b32.xlu1 %v1259_v26, %s1085_s26  ;;  %s646_s26 = sshll.u32 %s642_s8, 4  ;;  %s647_s26 = int_to_ptr.hbm [resolvable:$true] %s646_s26 }
 0x14e   : > { %488 = vrot.lane.b32.xlu2 %v1259_v26, %s1087_s11  ;;  %s1013_s11 = sshra.s32 %s647_s26, 4  ;;  %s1014_s11 = int_to_ptr.hbm [resolvable:$true] %s1013_s11 }
 0x14f   : > { %s1015_s19 = scalar_lea.hbm %s1014_s11, 16  ;;  %p1020_p9 = scmp.lt.s32.totalorder %s1014_s11, %s1331_s4 }
 0x150   : > { %p1016_p1 = scmp.ne.s32.totalorder %s1014_s11, %s1015_s19 }
 0x152   : > { %p1017_p4 = pnand %p1016_p1, %p1203_p3 }
 0x154   : > { %p1018_p8 = pneg %p1017_p4 }
 0x155   : > { %385 = vrot.lane.b32.xlu0 %v1254_v23, %s1089_s13  ;;  %403 = vrot.lane.b32.xlu1 %v1254_v23, %s1090_s14 }
 0x156   : > { %470 = vrot.lane.b32.xlu2 %v1259_v26, %s1086_s9  ;;  %s631_s9 = scalar_lea.sflag [#allocation5], %s1230_s29 }
 0x15d   : > { %369 = vrot.lane.b32.xlu0 %v1259_v26, %s1091_s20  ;;  %387 = vrot.lane.b32.xlu1 %v1259_v26, %s1089_s13 }
 0x15e   : > { %432 = vrot.lane.b32.xlu2 %v1254_v23, %s1088_s12 }
 0x165   : > { %348 = vrot.lane.b32.xlu1 %v1254_v23, %s1092_s24  ;;  %523 = vperm.xlu0 %876, %v1249_v4  }
 0x166   : > { %405 = vrot.lane.b32.xlu2 %v1259_v26, %s1090_s14  ;;  %s1019_s14 = scalar_lea.hbm %s1331_s4, 32 }
 0x167   : > { %p1021_p10 = scmp.lt.s32.totalorder %s1019_s14, %s1015_s19 }
 0x169   : > { %p1022_p2 = por %p1021_p10, %p1020_p9 }
 0x16b   : > { %p1023_p11 = pnand %p1022_p2, %p1018_p8 }
 0x16d   : > { %579 = vrot.lane.b32.xlu1 %v1246_v2, %s1093_s25  ;;  %878 = vset.pattern.permute.xlu0 %v1095_v29 }
 0x16e   : > { %367 = vrot.lane.b32.xlu2 %v1254_v23, %s1091_s20  ;;  %v396_v23 = vperm.slane %v393_v19, 1 }
 0x176   : > { %350 = vrot.lane.b32.xlu2 %v1259_v26, %s1092_s24  ;;  %v377_v26 = vperm.slane %v375_v20, 0 }
 0x17e   : > { %576 = vperm.xlu2 %877, %v1249_v4  }
 0x1a0   : > { %v487_v28 = vpop.permute.xlu2 %486 }
 0x1a8   : > { %v489_v33 = vpop.permute.xlu2 %488 }
 0x1a9   : > { %v491_v34 = vsel %vm490_vm2, %v487_v28, %v489_v33  ;;  %v492_v35 = vsel %vm490_vm2, %v489_v33, %v487_v28 }
 0x1aa   : > { %v500_v36 = vmul.f32 %v496_v31, %v491_v34  ;;  %v501_v37 = vmul.f32 %v497_v32, %v492_v35  ;;  %v357_v35 = vld [vmem:[#allocation9] ss:$8 sm:$0x3] }
 0x1ab   : > { %v360_v39 = vperm.slane %v357_v35, 1 }
 0x1ac   : > { %536 = vmatpush.msra.mxu2 %v500_v36  ;;  %556 = vmatpush.msra.mxu3 %v501_v37 }
 0x1b0   : > { %v471_v38 = vpop.permute.xlu2 %470 }
 0x1b7   : > { %v451_v42 = vpop.permute.xlu0 %450  ;;  %v469_v43 = vpop.permute.xlu1 %468 }
 0x1b8   : > { %v473_v44 = vsel %vm472_vm3, %v469_v43, %v471_v38  ;;  %v474_v45 = vsel %vm472_vm3, %v471_v38, %v469_v43  ;;  %v433_v46 = vpop.permute.xlu2 %432  ;;  %v359_v38 = vperm.slane %v357_v35, 0 }
 0x1b9   : > { %v482_v47 = vmul.f32 %v478_v40, %v473_v44  ;;  %v483_v48 = vmul.f32 %v479_v41, %v474_v45 }
 0x1bb   : > { %537 = vmatpush.msra.mxu2 %v482_v47  ;;  %557 = vmatpush.msra.mxu3 %v483_v48  ;;  %v574_v47 = vld.sshfl [vmem:[#allocation1 + $0x8] sm:$0xff pattern:$0x75316420] }
 0x1bc   : > { %769 = vmatpush.msk.msrb.mxu1 %vm301_vm0, %v574_v47 }
 0x1bf   : > { %v435_v55 = vpop.permute.xlu0 %434  ;;  %v453_v56 = vpop.permute.xlu1 %452 }
 0x1c0   : > { %v437_v60 = vsel %vm436_vm4, %v433_v46, %v435_v55  ;;  %v438_v61 = vsel %vm436_vm4, %v435_v55, %v433_v46  ;;  %v455_v62 = vsel %vm454_vm5, %v451_v42, %v453_v56  ;;  %v456_v63 = vsel %vm454_vm5, %v453_v56, %v451_v42  ;;  %v406_v6 = vpop.permute.xlu2 %405  ;;  %v573_v46 = vld.sshfl [vmem:[#allocation1] sm:$0xff pattern:$0x75316420] }
 0x1c1   : > { %v464_v0 = vmul.f32 %v460_v52, %v455_v62  ;;  %v465_v1 = vmul.f32 %v461_v53, %v456_v63  ;;  %v446_v7 = vmul.f32 %v442_v57, %v437_v60  ;;  %v447_v8 = vmul.f32 %v443_v58, %v438_v61  ;;  %767 = vmatpush.msk.msrb.mxu0 %vm301_vm0, %v573_v46 }
 0x1c3   : > { %538 = vmatpush.msra.mxu2 %v464_v0  ;;  %558 = vmatpush.msra.mxu3 %v465_v1 }
 0x1c5   : > { %539 = vmatpush.msra.mxu2 %v446_v7  ;;  %559 = vmatpush.msra.mxu3 %v447_v8 }
 0x1c7   : > { %v386_v13 = vpop.permute.xlu0 %385  ;;  %v404_v14 = vpop.permute.xlu1 %403  ;;  %560 = vmatpush.msra.mxu3 %v429_v9  ;;  %540 = vmatpush.msra.mxu2 %v428_v10 }
 0x1c8   : > { %v408_v15 = vsel %vm407_vm6, %v404_v14, %v406_v6  ;;  %v409_v16 = vsel %vm407_vm6, %v406_v6, %v404_v14  ;;  %v368_v21 = vpop.permute.xlu2 %367 }
 0x1c9   : > { %v417_v17 = vmul.f32 %v413_v11, %v409_v16  ;;  %v418_v18 = vmul.f32 %v414_v12, %v408_v15 }
 0x1cb   : > { %541 = vmatpush.msra.mxu2 %v417_v17  ;;  %561 = vmatpush.msra.mxu3 %v418_v18 }
 0x1cf   : > { %v370_v24 = vpop.permute.xlu0 %369  ;;  %v388_v25 = vpop.permute.xlu1 %387 }
 0x1d0   : > { %v372_v28 = vsel %vm371_vm7, %v368_v21, %v370_v24  ;;  %v373_v30 = vsel %vm371_vm7, %v370_v24, %v368_v21  ;;  %v390_v31 = vsel %vm389_vm8, %v386_v13, %v388_v25  ;;  %v391_v32 = vsel %vm389_vm8, %v388_v25, %v386_v13  ;;  %v351_v40 = vpop.permute.xlu2 %350 }
 0x1d1   : > { %v399_v33 = vmul.f32 %v395_v22, %v391_v32  ;;  %v400_v34 = vmul.f32 %v396_v23, %v390_v31  ;;  %v381_v36 = vmul.f32 %v377_v26, %v373_v30  ;;  %v382_v37 = vmul.f32 %v378_v27, %v372_v28 }
 0x1d3   : > { %542 = vmatpush.msra.mxu2 %v399_v33  ;;  %562 = vmatpush.msra.mxu3 %v400_v34 }
 0x1d5   : > { %543 = vmatpush.msra.mxu2 %v381_v36  ;;  %563 = vmatpush.msra.mxu3 %v382_v37 }
 0x1d7   : > { %v349_v41 = vpop.permute.xlu1 %348  ;;  %v524_v48 = vpop.permute.xlu0 %523 }
 0x1d8   : > { %v355_v42 = vsel %vm354_vm9, %v349_v41, %v351_v40  ;;  %v356_v43 = vsel %vm354_vm9, %v351_v40, %v349_v41  ;;  %v577_v4 = vpop.permute.xlu2 %576 }
 0x1d9   : > { %v363_v44 = vmul.f32 %v359_v38, %v356_v43  ;;  %v364_v45 = vmul.f32 %v360_v39, %v355_v42 }
 0x1db   : > { %544 = vmatpush.msra.mxu2 %v363_v44  ;;  %564 = vmatpush.msra.mxu3 %v364_v45 }
 0x1dc   : > { %765 = vmatmul.msk.f32.vlgmr.msra.gmra.mxu2 %vm526_vm10, %v1246_v2  ;;  %766 = vmatmul.msk.f32.vlgmr.msra.gmra.mxu3 %vm526_vm10, %v1246_v2 }
 0x1df   : > { %v580_v54 = vpop.permute.xlu1 %579 }
 0x25f   : > { %v546_v49 = vpop.f32.mrf.mxu2  ;;  %v566_v50 = vpop.f32.mrf.mxu3 }
 0x260   : > { %v547_v51 = vadd.f32 %v546_v49, %v524_v48  ;;  %v567_v52 = vadd.f32 %v566_v50, %v524_v48 }
 0x262   : > { %v569_v53 = vmax.f32 %v547_v51, 0.0  ;;  %v570_v2 = vmax.f32 %v567_v52, 0.0 }
 0x264   : > { %603 = vmatpush.msrb.mxu0 %v569_v53  ;;  %623 = vmatpush.msrb.mxu1 %v570_v2 }
 0x265   : > { %768 = vmatmul.msk.f32.vlgmr.msrb.gmra.mxu0 %vm581_vm11, %v580_v54  ;;  %770 = vmatmul.msk.f32.vlgmr.msrb.gmra.mxu1 %vm581_vm11, %v580_v54 }
 0x2e2   : > { %v625_v55 = vpop.f32.mrf.mxu1  ;;  %v605_v56 = vpop.f32.mrf.mxu0 }
 0x2e3   : > { %v626_v57 = vadd.f32 %v625_v55, %v577_v4  ;;  %v606_v58 = vadd.f32 %v605_v56, %v577_v4 }
 0x2e5   : > { %629 = vst [vmem:[%s261_s10 + $0x8] sm:$0xff] %v626_v57 }
 0x2e6   : > { %628 = vst [vmem:[%s261_s10] sm:$0xff] %v606_v58 }
 0x2e7   : > { %1026 = shalt.err (!%p1023_p11)
}
 0x2e8   : > { %792 = dma.vmem_to_hbm [thread:$0]  (%p1203_p3), %s645_s21, 256, %s647_s26, %s631_s9  }
 0x2e9 PF: > { %s658_s29 = sand.u32 1, %s1061_s15   ;;  %p1338_p12 = scmp.ge.s32.totalorder %s1073_s18, 2 }
 0x2ea   : > { %s659_s25 = scalar_lea.sflag [#allocation5], %s658_s29 }
 0x2eb   : > { %p809_p13 = pnand %p1338_p12, %p1156_p6 }
 0x2ed   : > { %p810_p0 = pneg %p809_p13 }
 0x2ef   : > { %1056 = dma.done.wait (%p810_p0), %s659_s25, 256  }
 0x2f0   : > { %1058 = vsyncadd (%p810_p0), %s659_s25, 4294967040  ;;  %p19_p5 = scmp.ge.s32.totalorder %s1190_s23, 4   ;;  %s1339_s15 = smov %s1065_s16 }
 0x2f1   : > { %s1340_s16 = smov %s1069_s17  ;;  %s1341_s17 = smov %s1199_s27 }
 0x2f2   : > { %s1342_s18 = smov %s1190_s23  ;;  %21 = sbr.rel (!%p19_p5) target bundleno = 7 (0x7), region = 101 }
 0x2f7   :  { %665 = vsyncpa [#allocation4], 1 }
 0x2f8   :  { %667 = vsyncpa [#allocation4 + $0x1], 1 }
 0x2f9   :  { %668 = vsyncpa [#allocation7], 1 }
 0x2fa   :  { %669 = vsyncpa [#allocation10], 1 }
 0x2fb   :  { %670 = vsyncpa [#allocation5], 1 }
 0x2fc   :  { %672 = vsyncpa [#allocation5 + $0x1], 1 }

</bundles_post_ra>
